<compile_context>
chip_gen: v6e
topology: v6e:2x2x1
jax: 0.10.0
libtpu: 0.0.40
codegen_flags: <defaults>
</compile_context>

<pallas_src>
import functools

import numpy as np
import jax
import jax.numpy as jnp
from jax.experimental import pallas as pl
from jax.experimental.pallas import tpu as pltpu

_LANE = 128          # TPU vreg lane width
_THRESH = 0.4        # "irrelevant" threshold from the module
_ROW_TILE = 1024     # rows (of 128 lanes) per grid step: 512 KB/input block


def _tile_counts(syn, ant, lab, valid):
    """Per-tile (8, 128) int32 partial counts.

    rows 0..2 : # items with label syn(1) / ant(2) / irrel(0)
    rows 3..5 : # of those items predicted correctly
    rows 6..7 : zero padding (keeps the accumulator add a full unmasked vreg)
    """
    both_low = jnp.logical_and(syn <= _THRESH, ant <= _THRESH)
    not_low = jnp.logical_not(both_low)

    is_syn = jnp.logical_and(lab == 1, valid)
    is_ant = jnp.logical_and(lab == 2, valid)
    is_irr = jnp.logical_and(lab == 0, valid)

    # argmax(log_softmax([syn, ant])) == argmax([syn, ant]); torch.argmax
    # breaks ties toward index 0 (synonym), hence `syn >= ant` for class 0.
    pred_syn = jnp.logical_and(syn >= ant, not_low)   # pred == 0
    pred_ant = jnp.logical_and(ant > syn, not_low)    # pred == 1
    # pred == 2  <=>  both_low

    masks = (
        is_syn,
        is_ant,
        is_irr,
        jnp.logical_and(is_syn, pred_syn),
        jnp.logical_and(is_ant, pred_ant),
        jnp.logical_and(is_irr, both_low),
    )
    # Sublane-direction int32 sums only (VALU); keep results lane-resident.
    rows = [jnp.sum(m.astype(jnp.int32), axis=0, keepdims=True) for m in masks]
    pad = jnp.zeros((8 - len(rows), syn.shape[1]), jnp.int32)
    return jnp.concatenate(rows + [pad], axis=0)       # (8, 128)


def _phase1_accuracy_kernel(syn_ref, ant_ref, lab_ref, out_ref, acc_ref, *,
                            n, rt):
    """Row-tiled streaming reduction.

    syn_ref, ant_ref : VMEM f32[(rt, 128)]  current row tile of scores
    lab_ref          : VMEM i32[(rt, 128)]  current row tile of labels
    out_ref          : VMEM f32[(1, 128)]   lanes 0..2 = [syn, ant, irrel] acc %
    acc_ref          : VMEM i32[(8, 128)]   persistent partial-count scratch
    """
    i = pl.program_id(0)

    @pl.when(i == 0)
    def _init():
        acc_ref[...] = jnp.zeros_like(acc_ref)

    syn = syn_ref[...]
    ant = ant_ref[...]
    lab = lab_ref[...]

    # Validity mask from the global flat element index (handles both the
    # lane padding of the last 128-row and any out-of-bounds rows of a
    # partial last tile) -- no sentinel labels needed.
    row = jax.lax.broadcasted_iota(jnp.int32, (rt, _LANE), 0)
    lane = jax.lax.broadcasted_iota(jnp.int32, (rt, _LANE), 1)
    flat = (i * rt + row) * _LANE + lane
    valid = flat < n

    acc_ref[...] += _tile_counts(syn, ant, lab, valid)

    @pl.when(i == pl.num_programs(0) - 1)
    def _finalize():
        # Single cross-lane (XLU) reduction of the accumulator.
        counts = jnp.sum(acc_ref[...], axis=1, keepdims=True)      # (8, 1) i32
        counts_f = counts.astype(jnp.float32)
        tot = counts_f[0:3, :]                                      # (3, 1)
        cor = counts_f[3:6, :]                                      # (3, 1)
        # size == 0 -> accuracy 0 (matches the module)
        accs = jnp.where(tot > 0.0,
                         cor / jnp.maximum(tot, 1.0) * 100.0,
                         0.0)                                       # (3, 1)

        out_lane = jax.lax.broadcasted_iota(jnp.int32, (1, _LANE), 1)
        out = jnp.where(out_lane == 0, accs[0:1, :], 0.0)
        out = jnp.where(out_lane == 1, accs[1:2, :], out)
        out = jnp.where(out_lane == 2, accs[2:3, :], out)
        out_ref[...] = out                                          # lane-dense store


def phase1_accuracy(synonymy_scores, antonymy_scores, labels):
    """Pallas equivalent of Phase1Accuracy().forward(syn, ant, labels).

    Accepts (N,) or (N, 1) score arrays and (N,) labels; returns a (3,)
    float32 array [syn_acc, ant_acc, irrel_acc] (percentages).
    """
    syn = jnp.asarray(synonymy_scores, jnp.float32).reshape(-1)
    ant = jnp.asarray(antonymy_scores, jnp.float32).reshape(-1)
    lab = jnp.asarray(labels, jnp.int32).reshape(-1)
    n = int(syn.shape[0])

    rows = max(pl.cdiv(n, _LANE), 1)
    n_pad = rows * _LANE
    if n_pad != n:
        # Single fused pad per array; padded values are ignored in-kernel
        # via the `flat < n` validity mask (no sentinel labels required).
        syn = jnp.pad(syn, (0, n_pad - n))
        ant = jnp.pad(ant, (0, n_pad - n))
        lab = jnp.pad(lab, (0, n_pad - n))
    syn2 = syn.reshape(rows, _LANE)
    ant2 = ant.reshape(rows, _LANE)
    lab2 = lab.reshape(rows, _LANE)

    # Row tile: full array for small batches (nothing to pipeline), 1024-row
    # tiles (512 KB per input block, ~3 MB live w/ double-buffering) beyond.
    rt = rows if rows <= _ROW_TILE else _ROW_TILE
    grid = (pl.cdiv(rows, rt),)

    kernel = functools.partial(_phase1_accuracy_kernel, n=n, rt=rt)
    out = pl.pallas_call(
        kernel,
        out_shape=jax.ShapeDtypeStruct((1, _LANE), jnp.float32),
        grid=grid,
        in_specs=[
            pl.BlockSpec((rt, _LANE), lambda i: (i, 0)),
            pl.BlockSpec((rt, _LANE), lambda i: (i, 0)),
            pl.BlockSpec((rt, _LANE), lambda i: (i, 0)),
        ],
        out_specs=pl.BlockSpec((1, _LANE), lambda i: (0, 0)),
        scratch_shapes=[pltpu.VMEM((8, _LANE), jnp.int32)],
        compiler_params=pltpu.CompilerParams(
            dimension_semantics=("arbitrary",)),
    )(syn2, ant2, lab2)

    return out[0, :3]   # [syn_acc, ant_acc, irrel_acc]


def _reference(syn_np, ant_np, lab_np):
    """Pure-Python mirror of the torch loop (the spec)."""
    thresh = np.float32(_THRESH)
    correct = [0, 0, 0]
    total = [0, 0, 0]
    for s, a, l in zip(syn_np, ant_np, lab_np):
        pred = 0 if s >= a else 1          # argmax(log_softmax([s, a]))
        if s <= thresh and a <= thresh:
            pred = 2
        if l == 1:
            total[0] += 1
            correct[0] += int(pred == 0)
        elif l == 2:
            total[1] += 1
            correct[1] += int(pred == 1)
        elif l == 0:
            total[2] += 1
            correct[2] += int(pred == 2)
    return np.array([(c / t * 100.0) if t else 0.0
                     for c, t in zip(correct, total)], dtype=np.float32)


if __name__ == "__main__":
    key = jax.random.PRNGKey(0)

    ok = True
    # Small batch consistent with the module (8 (score, score, label) triples)
    # plus a ragged size that exercises the in-kernel validity mask.
    for N in (8, 300):
        k_s, k_a, k_l, key = jax.random.split(key, 4)
        syn = jax.random.uniform(k_s, (N,), dtype=jnp.float32)
        ant = jax.random.uniform(k_a, (N,), dtype=jnp.float32)
        lab = jax.random.randint(k_l, (N,), 0, 3, dtype=jnp.int32)

        out = jax.block_until_ready(phase1_accuracy(syn, ant, lab))
        ref = _reference(np.asarray(syn), np.asarray(ant), np.asarray(lab))

        assert out.shape == (3,), out.shape
        if not np.allclose(np.asarray(out), ref, atol=1e-5):
            ok = False
            print("MISMATCH", N, np.asarray(out), ref)

    if ok:
        print("KERNEL_OK")
</pallas_src>

<mosaic_0001>
module attributes {stable_mosaic.version = 11 : i64} {
  func.func @_phase1_accuracy_kernel(%arg0: i32, %arg1: memref<1x128xf32, #tpu.memory_space<vmem>>, %arg2: memref<1x128xf32, #tpu.memory_space<vmem>>, %arg3: memref<1x128xi32, #tpu.memory_space<vmem>>, %arg4: memref<1x128xf32, #tpu.memory_space<vmem>>, %arg5: memref<8x128xi32, #tpu.memory_space<vmem>>) attributes {dimension_semantics = [#tpu.dimension_semantics<arbitrary>], iteration_bounds = array<i64: 1>, scalar_prefetch = 0 : i64, scratch_operands = 1 : i64, tpu.core_type = #tpu.core_type<tc>, window_params = [{transform_indices = @transform_0, window_bounds = array<i64: 1, 128>}, {transform_indices = @transform_1, window_bounds = array<i64: 1, 128>}, {transform_indices = @transform_2, window_bounds = array<i64: 1, 128>}, {pipeline_mode = #tpu.pipeline_mode<synchronous>, transform_indices = @transform_3, window_bounds = array<i64: 1, 128>}]} {
    %c0_i32 = arith.constant 0 : i32
    %0 = arith.cmpi eq, %arg0, %c0_i32 : i32
    %1 = arith.extui %0 : i1 to i32
    %c0_i32_0 = arith.constant 0 : i32
    %2 = arith.cmpi ne, %1, %c0_i32_0 : i32
    scf.if %2 {
      %c0_i32_23 = arith.constant 0 : i32
      %64 = vector.broadcast %c0_i32_23 : i32 to vector<8x128xi32>
      %c0_24 = arith.constant 0 : index
      %c0_25 = arith.constant 0 : index
      %65 = vector.load %arg5[%c0_24, %c0_25] : memref<8x128xi32, #tpu.memory_space<vmem>>, vector<8x128xi32>
      tpu.vector_store %arg5[%c0_24, %c0_25], %64 {strides = array<i32>} : memref<8x128xi32, #tpu.memory_space<vmem>>, vector<8x128xi32>,
    } else {
    }
    %c0 = arith.constant 0 : index
    %c0_1 = arith.constant 0 : index
    %3 = vector.load %arg1[%c0, %c0_1] : memref<1x128xf32, #tpu.memory_space<vmem>>, vector<1x128xf32>
    %c0_2 = arith.constant 0 : index
    %c0_3 = arith.constant 0 : index
    %4 = vector.load %arg2[%c0_2, %c0_3] : memref<1x128xf32, #tpu.memory_space<vmem>>, vector<1x128xf32>
    %c0_4 = arith.constant 0 : index
    %c0_5 = arith.constant 0 : index
    %5 = vector.load %arg3[%c0_4, %c0_5] : memref<1x128xi32, #tpu.memory_space<vmem>>, vector<1x128xi32>
    %6 = tpu.iota {dimensions = array<i32: 0>} : vector<1x128xi32>
    %7 = tpu.iota {dimensions = array<i32: 1>} : vector<1x128xi32>
    %c1_i32 = arith.constant 1 : i32
    %8 = arith.muli %arg0, %c1_i32 : i32
    %9 = vector.broadcast %8 : i32 to vector<1x128xi32>
    %10 = arith.addi %9, %6 : vector<1x128xi32>
    %c128_i32 = arith.constant 128 : i32
    %11 = vector.broadcast %c128_i32 : i32 to vector<1x128xi32>
    %12 = arith.muli %10, %11 : vector<1x128xi32>
    %13 = arith.addi %12, %7 : vector<1x128xi32>
    %c8_i32 = arith.constant 8 : i32
    %14 = vector.broadcast %c8_i32 : i32 to vector<1x128xi32>
    %15 = arith.cmpi slt, %13, %14 : vector<1x128xi32>
    %c0_6 = arith.constant 0 : index
    %c0_7 = arith.constant 0 : index
    %16 = vector.load %arg5[%c0_6, %c0_7] : memref<8x128xi32, #tpu.memory_space<vmem>>, vector<8x128xi32>
    %cst = arith.constant 4.000000e-01 : f32
    %17 = vector.broadcast %cst : f32 to vector<1x128xf32>
    %18 = arith.cmpf ole, %3, %17 : vector<1x128xf32>
    %cst_8 = arith.constant 4.000000e-01 : f32
    %19 = vector.broadcast %cst_8 : f32 to vector<1x128xf32>
    %20 = arith.cmpf ole, %4, %19 : vector<1x128xf32>
    %21 = arith.andi %18, %20 : vector<1x128xi1>
    %cst_9 = arith.constant dense<true> : vector<1x128xi1>
    %22 = arith.xori %21, %cst_9 : vector<1x128xi1>
    %c1_i32_10 = arith.constant 1 : i32
    %23 = vector.broadcast %c1_i32_10 : i32 to vector<1x128xi32>
    %24 = arith.cmpi eq, %5, %23 : vector<1x128xi32>
    %25 = arith.andi %24, %15 : vector<1x128xi1>
    %c2_i32 = arith.constant 2 : i32
    %26 = vector.broadcast %c2_i32 : i32 to vector<1x128xi32>
    %27 = arith.cmpi eq, %5, %26 : vector<1x128xi32>
    %28 = arith.andi %27, %15 : vector<1x128xi1>
    %c0_i32_11 = arith.constant 0 : i32
    %29 = vector.broadcast %c0_i32_11 : i32 to vector<1x128xi32>
    %30 = arith.cmpi eq, %5, %29 : vector<1x128xi32>
    %31 = arith.andi %30, %15 : vector<1x128xi1>
    %32 = arith.cmpf oge, %3, %4 : vector<1x128xf32>
    %33 = arith.andi %32, %22 : vector<1x128xi1>
    %34 = arith.cmpf ogt, %4, %3 : vector<1x128xf32>
    %35 = arith.andi %34, %22 : vector<1x128xi1>
    %36 = arith.andi %25, %33 : vector<1x128xi1>
    %37 = arith.andi %28, %35 : vector<1x128xi1>
    %38 = arith.andi %31, %21 : vector<1x128xi1>
    %39 = arith.extui %25 : vector<1x128xi1> to vector<1x128xi32>
    %cst_12 = arith.constant dense<0> : vector<128xi32>
    %40 = vector.multi_reduction <add>, %39, %cst_12 [0] : vector<1x128xi32> to vector<128xi32>
    %41 = vector.shape_cast %40 : vector<128xi32> to vector<1x128xi32>
    %42 = arith.extui %28 : vector<1x128xi1> to vector<1x128xi32>
    %cst_13 = arith.constant dense<0> : vector<128xi32>
    %43 = vector.multi_reduction <add>, %42, %cst_13 [0] : vector<1x128xi32> to vector<128xi32>
    %44 = vector.shape_cast %43 : vector<128xi32> to vector<1x128xi32>
    %45 = arith.extui %31 : vector<1x128xi1> to vector<1x128xi32>
    %cst_14 = arith.constant dense<0> : vector<128xi32>
    %46 = vector.multi_reduction <add>, %45, %cst_14 [0] : vector<1x128xi32> to vector<128xi32>
    %47 = vector.shape_cast %46 : vector<128xi32> to vector<1x128xi32>
    %48 = arith.extui %36 : vector<1x128xi1> to vector<1x128xi32>
    %cst_15 = arith.constant dense<0> : vector<128xi32>
    %49 = vector.multi_reduction <add>, %48, %cst_15 [0] : vector<1x128xi32> to vector<128xi32>
    %50 = vector.shape_cast %49 : vector<128xi32> to vector<1x128xi32>
    %51 = arith.extui %37 : vector<1x128xi1> to vector<1x128xi32>
    %cst_16 = arith.constant dense<0> : vector<128xi32>
    %52 = vector.multi_reduction <add>, %51, %cst_16 [0] : vector<1x128xi32> to vector<128xi32>
    %53 = vector.shape_cast %52 : vector<128xi32> to vector<1x128xi32>
    %54 = arith.extui %38 : vector<1x128xi1> to vector<1x128xi32>
    %cst_17 = arith.constant dense<0> : vector<128xi32>
    %55 = vector.multi_reduction <add>, %54, %cst_17 [0] : vector<1x128xi32> to vector<128xi32>
    %56 = vector.shape_cast %55 : vector<128xi32> to vector<1x128xi32>
    %c0_i32_18 = arith.constant 0 : i32
    %57 = vector.broadcast %c0_i32_18 : i32 to vector<2x128xi32>
    %58 = tpu.concatenate %41, %44, %47, %50, %53, %56, %57 in 0 : vector<1x128xi32>, vector<1x128xi32>, vector<1x128xi32>, vector<1x128xi32>, vector<1x128xi32>, vector<1x128xi32>, vector<2x128xi32> -> vector<8x128xi32>
    %59 = arith.addi %16, %58 : vector<8x128xi32>
    %c0_19 = arith.constant 0 : index
    %c0_20 = arith.constant 0 : index
    %60 = vector.load %arg5[%c0_19, %c0_20] : memref<8x128xi32, #tpu.memory_space<vmem>>, vector<8x128xi32>
    tpu.vector_store %arg5[%c0_19, %c0_20], %59 {strides = array<i32>} : memref<8x128xi32, #tpu.memory_space<vmem>>, vector<8x128xi32>,
    %c0_i32_21 = arith.constant 0 : i32
    %61 = arith.cmpi eq, %arg0, %c0_i32_21 : i32
    %62 = arith.extui %61 : i1 to i32
    %c0_i32_22 = arith.constant 0 : i32
    %63 = arith.cmpi ne, %62, %c0_i32_22 : i32
    scf.if %63 {
      %c0_23 = arith.constant 0 : index
      %c0_24 = arith.constant 0 : index
      %64 = vector.load %arg5[%c0_23, %c0_24] : memref<8x128xi32, #tpu.memory_space<vmem>>, vector<8x128xi32>
      %cst_25 = arith.constant dense<0> : vector<8xi32>
      %65 = vector.multi_reduction <add>, %64, %cst_25 [1] : vector<8x128xi32> to vector<8xi32>
      %66 = vector.shape_cast %65 : vector<8xi32> to vector<8x1xi32>
      %67 = arith.sitofp %66 : vector<8x1xi32> to vector<8x1xf32>
      %68 = vector.extract_strided_slice %67 {offsets = [0, 0], sizes = [3, 1], strides = [1, 1]} : vector<8x1xf32> to vector<3x1xf32>
      %69 = vector.extract_strided_slice %67 {offsets = [3, 0], sizes = [3, 1], strides = [1, 1]} : vector<8x1xf32> to vector<3x1xf32>
      %cst_26 = arith.constant 0.000000e+00 : f32
      %70 = vector.broadcast %cst_26 : f32 to vector<3x1xf32>
      %71 = arith.cmpf ogt, %68, %70 : vector<3x1xf32>
      %cst_27 = arith.constant 1.000000e+00 : f32
      %72 = vector.broadcast %cst_27 : f32 to vector<3x1xf32>
      %73 = arith.maximumf %68, %72 : vector<3x1xf32>
      %74 = arith.divf %69, %73 : vector<3x1xf32>
      %cst_28 = arith.constant 1.000000e+02 : f32
      %75 = vector.broadcast %cst_28 : f32 to vector<3x1xf32>
      %76 = arith.mulf %74, %75 : vector<3x1xf32>
      %cst_29 = arith.constant 0.000000e+00 : f32
      %77 = vector.broadcast %cst_29 : f32 to vector<3x1xf32>
      %78 = arith.select %71, %76, %77 : vector<3x1xi1>, vector<3x1xf32>
      %79 = tpu.iota {dimensions = array<i32: 1>} : vector<1x128xi32>
      %c0_i32_30 = arith.constant 0 : i32
      %80 = vector.broadcast %c0_i32_30 : i32 to vector<1x128xi32>
      %81 = arith.cmpi eq, %79, %80 : vector<1x128xi32>
      %82 = vector.extract_strided_slice %78 {offsets = [0, 0], sizes = [1, 1], strides = [1, 1]} : vector<3x1xf32> to vector<1x1xf32>
      %cst_31 = arith.constant 0.000000e+00 : f32
      %83 = vector.shape_cast %82 : vector<1x1xf32> to vector<1x1xf32>
      %84 = vector.broadcast %83 : vector<1x1xf32> to vector<1x128xf32>
      %85 = vector.broadcast %cst_31 : f32 to vector<1x128xf32>
      %86 = arith.select %81, %84, %85 : vector<1x128xi1>, vector<1x128xf32>
      %c1_i32_32 = arith.constant 1 : i32
      %87 = vector.broadcast %c1_i32_32 : i32 to vector<1x128xi32>
      %88 = arith.cmpi eq, %79, %87 : vector<1x128xi32>
      %89 = vector.extract_strided_slice %78 {offsets = [1, 0], sizes = [1, 1], strides = [1, 1]} : vector<3x1xf32> to vector<1x1xf32>
      %90 = vector.shape_cast %89 : vector<1x1xf32> to vector<1x1xf32>
      %91 = vector.broadcast %90 : vector<1x1xf32> to vector<1x128xf32>
      %92 = arith.select %88, %91, %86 : vector<1x128xi1>, vector<1x128xf32>
      %c2_i32_33 = arith.constant 2 : i32
      %93 = vector.broadcast %c2_i32_33 : i32 to vector<1x128xi32>
      %94 = arith.cmpi eq, %79, %93 : vector<1x128xi32>
      %95 = vector.extract_strided_slice %78 {offsets = [2, 0], sizes = [1, 1], strides = [1, 1]} : vector<3x1xf32> to vector<1x1xf32>
      %96 = vector.shape_cast %95 : vector<1x1xf32> to vector<1x1xf32>
      %97 = vector.broadcast %96 : vector<1x1xf32> to vector<1x128xf32>
      %98 = arith.select %94, %97, %92 : vector<1x128xi1>, vector<1x128xf32>
      %c0_34 = arith.constant 0 : index
      %c0_35 = arith.constant 0 : index
      %99 = vector.load %arg4[%c0_34, %c0_35] : memref<1x128xf32, #tpu.memory_space<vmem>>, vector<1x128xf32>
      tpu.vector_store %arg4[%c0_34, %c0_35], %98 {strides = array<i32>} : memref<1x128xf32, #tpu.memory_space<vmem>>, vector<1x128xf32>,
    } else {
    }
    return
  }
  func.func @transform_0(%arg0: i32) -> (i32, i32) {
    %c0_i32 = arith.constant 0 : i32
    %c0_i32_0 = arith.constant 0 : i32
    return %arg0, %c0_i32 : i32, i32
  }
  func.func @transform_1(%arg0: i32) -> (i32, i32) {
    %c0_i32 = arith.constant 0 : i32
    %c0_i32_0 = arith.constant 0 : i32
    return %arg0, %c0_i32 : i32, i32
  }
  func.func @transform_2(%arg0: i32) -> (i32, i32) {
    %c0_i32 = arith.constant 0 : i32
    %c0_i32_0 = arith.constant 0 : i32
    return %arg0, %c0_i32 : i32, i32
  }
  func.func @transform_3(%arg0: i32) -> (i32, i32) {
    %c0_i32 = arith.constant 0 : i32
    %c0_i32_0 = arith.constant 0 : i32
    %c0_i32_1 = arith.constant 0 : i32
    return %c0_i32, %c0_i32_0 : i32, i32
  }
}

</mosaic_0001>

<bundles_post_ra>
// kernel: tpu_custom_call.1
= control target key start
LH: loop header
LB: loop body
LE: loop exit
PB: predicated region body
PF: predicated region fallthrough
CT: control target
= control target key end

     0   :  { %8 = vsyncpa [#allocation4], 0  ;;  %s298_s0 = inlined_call_operand.hbm [shape: f32[1,128], index: 0, kind: input, shape index: {}]   ;;  %s299_s1 = inlined_call_operand.vmem [shape: f32[1,128], index: 1, kind: input, shape index: {}]   ;;  %s300_s2 = inlined_call_operand.vmem [shape: s32[1,128], index: 2, kind: input, shape index: {}]   ;;  %s301_s3 = inlined_call_operand.hbm [shape: f32[1,128], index: 3, kind: output, shape index: {}]  }
   0x1   :  { %9 = vsyncpa [#allocation5], 0  ;;  %s216_s12 = smov [#allocation3]  }
   0x2   :  { %s16_s13 = sshll.u32 %s216_s12, 4  ;;  %s17_s13 = int_to_ptr.vmem [resolvable:$true] %s16_s13 }
   0x3   :  { %s180_s14 = scalar_lea.vmem %s17_s13, 16  ;;  %s184_s15 = scalar_lea.vmem %s17_s13, 32 }
   0x4   :  { %p181_p0 = scmp.ne.s32.totalorder %s17_s13, %s180_s14  ;;  %p185_p1 = scmp.lt.s32.totalorder %s17_s13, %s17_s13 }
   0x5   :  { %p186_p2 = scmp.lt.s32.totalorder %s184_s15, %s180_s14 }
   0x7   :  { %p187_p3 = por %p186_p2, %p185_p1 }
   0x9   :  { %p188_p4 = pnand %p187_p3, %p181_p0 }
   0xb   :  { %191 = shalt.err (!%p188_p4)
}
   0xc   :  { %19 = dma.hbm_to_vmem [thread:$0]  %s298_s0, 16, %s17_s13, [#allocation4]  }
   0xd   :  { %212 = dma.done.wait [#allocation4], 16  }
   0xe   :  { %213 = vsyncadd [#allocation4], 4294967280  ;;  %v35_v0 = vlaneseq  ;;  %v217_v1 = vmov 0   ;;  %v32_v6 = vld [vmem:[#allocation3] sm:$0x1]  ;;  %vm218_vm6 = vmmov 1  }
   0xf   :  { %168 = vset.pattern.permute.xlu1 %v217_v1  ;;  %169 = vset.pattern.permute.xlu0 %v217_v1  ;;  %v33_v7 = vld [vmem:[%s299_s1] sm:$0x1]  ;;  %vm45_vm1 = vcmp.le.f32.partialorder %v32_v6, 0.4  ;;  %vm88_vm14 = vcmask 1040384   ;;  %s219_s0 = smov [#allocation6]  }
  0x10   :  { %v36_v2 = vshrl.u32 %v35_v0, 7  ;;  %v243_v3 = vand.u32 127, %v35_v0  ;;  %v34_v8 = vld [vmem:[%s300_s2] sm:$0x1]  ;;  %vm46_vm2 = vcmp.le.f32.partialorder %v33_v7, 0.4  ;;  %vm55_vm10 = vcmp.ge.f32.partialorder %v32_v6, %v33_v7 }
  0x11   :  { %vm49_vm3 = vcmp.eq.s32.totalorder %v34_v8, 1  ;;  %vm252_vm4 = vmand %vm45_vm1, %vm46_vm2  ;;  %vm51_vm5 = vcmp.eq.s32.totalorder %v34_v8, 2  ;;  %vm53_vm8 = vcmp.eq.s32.totalorder %v34_v8, 0  ;;  %vm57_vm12 = vcmp.gt.f32.partialorder %v33_v7, %v32_v6  ;;  %s155_s1 = sshll.u32 %s219_s0, 4  ;;  %s156_s1 = int_to_ptr.vmem [resolvable:$true] %s155_s1 }
  0x12   :  { %v41_v4 = vmul.u32 128, %v36_v2  ;;  %vm258_vm7 = vmxor %vm252_vm4, %vm218_vm6  ;;  %v70_v11 = vsub.s32 0, %v36_v2  ;;  %vm90_vm1 = vcmask 1041408   ;;  %s192_s2 = scalar_lea.vmem %s156_s1, 16  ;;  %s196_s22 = scalar_lea.vmem %s156_s1, 32 }
  0x13   :  { %vm56_vm15 = vmand %vm55_vm10, %vm258_vm7  ;;  %vm131_vm10 = vcmp.eq.s32.totalorder %v243_v3, 0  ;;  %p193_p5 = scmp.ne.s32.totalorder %s156_s1, %s192_s2  ;;  %p197_p6 = scmp.lt.s32.totalorder %s156_s1, %s156_s1 }
  0x14   :  { %v42_v5 = vadd.s32 %v41_v4, %v243_v3  ;;  %p198_p7 = scmp.lt.s32.totalorder %s196_s22, %s192_s2 }
  0x16   :  { %vm43_vm0 = vcmp.lt.s32.totalorder %v42_v5, 8  ;;  %p199_p8 = por %p198_p7, %p197_p6 }
  0x17   :  { %vm262_vm9 = vmand %vm49_vm3, %vm43_vm0 }
  0x18   :  { %vm266_vm11 = vmand %vm51_vm5, %vm43_vm0  ;;  %v62_v15 = vsel %vm262_vm9, 1, %v217_v1  ;;  %vm92_vm5 = vcmask 1042432   ;;  %p200_p9 = pnand %p199_p8, %p193_p5 }
  0x19   :  { %vm270_vm13 = vmand %vm53_vm8, %vm43_vm0  ;;  %v63_v16 = vsel %vm266_vm11, 1, %v217_v1  ;;  %vm94_vm8 = vcmask 1043456  }
  0x1a   :  { %v64_v17 = vsel %vm270_vm13, 1, %v217_v1  ;;  %v71_v18 = vrot.slane %v63_v16, %v70_v11  ;;  %vm58_vm0 = vmand %vm57_vm12, %vm258_vm7  ;;  %vm96_vm7 = vcmask 1044480   ;;  %vm143_vm12 = vcmp.eq.s32.totalorder %v243_v3, 2 }
  0x1b   :  { %v75_v19 = vrot.slane %v64_v17, %v70_v11  ;;  %vm59_vm2 = vmand %vm262_vm9, %vm56_vm15  ;;  %vm98_vm9 = vcmask 1045504  }
  0x1c   :  { %v89_v20 = vsel %vm88_vm14, %v62_v15, %v71_v18  ;;  %vm60_vm3 = vmand %vm266_vm11, %vm58_vm0  ;;  %v65_v21 = vsel %vm59_vm2, 1, %v217_v1  ;;  %vm138_vm11 = vcmp.eq.s32.totalorder %v243_v3, 1 }
  0x1d   :  { %v91_v22 = vsel %vm90_vm1, %v89_v20, %v75_v19  ;;  %vm61_vm6 = vmand %vm270_vm13, %vm252_vm4  ;;  %v66_v23 = vsel %vm60_vm3, 1, %v217_v1  ;;  %v79_v24 = vrot.slane %v65_v21, %v70_v11 }
  0x1e   :  { %v67_v25 = vsel %vm61_vm6, 1, %v217_v1  ;;  %v83_v26 = vrot.slane %v66_v23, %v70_v11 }
  0x1f   :  { %v87_v27 = vrot.slane %v67_v25, %v70_v11  ;;  %v93_v28 = vsel %vm92_vm5, %v91_v22, %v79_v24 }
  0x20   :  { %v95_v29 = vsel %vm94_vm8, %v93_v28, %v83_v26 }
  0x21   :  { %v97_v30 = vsel %vm96_vm7, %v95_v29, %v87_v27 }
  0x22   :  { %v99_v31 = vsel %vm98_vm9, %v97_v30, 0 }
  0x23   :  { %v107_v32 = vshrl.u32 %v99_v31, 16  ;;  %v106_v33 = vand.u32 65535, %v99_v31 }
  0x25   :  { %v109_v34 = vcvt.s32.f32 %v107_v32  ;;  %v108_v35 = vcvt.s32.f32 %v106_v33 }
  0x27   :  { %112 = vadd.xlane.f32.xlu0 %v109_v34 }
  0x2b   :  { %110 = vadd.xlane.f32.xlu0 %v108_v35 }
  0xb0   :  { %v113_v36 = vpop.xlane.xlu0 %112 }
  0xb1   :  { %v115_v37 = vcvt.f32.s32 %v113_v36 }
  0xb3   :  { %v116_v39 = vshll.u32 %v115_v37, 16 }
  0xb4   :  { %v111_v38 = vpop.xlane.xlu0 %110 }
  0xb5   :  { %v114_v40 = vcvt.f32.s32 %v111_v38 }
  0xb7   :  { %v117_v41 = vadd.s32 %v116_v39, %v114_v40 }
  0xb9   :  { %v118_v42 = vcvt.s32.f32 %v117_v41 }
  0xbb   :  { %v120_v43 = vmax.f32 %v118_v42, 1.0  ;;  %vm119_vm4 = vcmp.gt.f32.partialorder %v118_v42, 0.0 }
  0xbd   :  { %v122_v44 = vrot.slane %v120_v43, 5 }
  0xbf   :  { %170 = vrcp.f32 %v122_v44 }
  0xcc   :  { %v171_v45 = vpop.eup %170 }
  0xcd   :  { %v125_v46 = vmul.f32 %v171_v45, %v118_v42 }
  0xcf   :  { %v126_v47 = vmul.f32 100.0, %v125_v46 }
  0xd1   :  { %v128_v48 = vrot.slane %v126_v47, 3 }
  0xd3   :  { %v130_v49 = vsel %vm119_vm4, %v128_v48, 0.0 }
  0xd4   :  { %134 = vperm.xlu1 %168, %v130_v49  }
 0x14f   :  { %v135_v50 = vpop.permute.xlu1 %134 }
 0x150   :  { %v137_v51 = vsel %vm131_vm10, %v135_v50, 0.0 }
 0x151   :  { %v140_v52 = vrot.slane %v137_v51, 7 }
 0x153   :  { %v142_v53 = vsel %vm138_vm11, %v135_v50, %v140_v52 }
 0x154   :  { %v145_v54 = vrot.slane %v142_v53, 7 }
 0x156   :  { %v147_v55 = vsel %vm143_vm12, %v135_v50, %v145_v54 }
 0x157   :  { %148 = vst [vmem:[#allocation6 - $0x2] sm:$0x4] %v147_v55 }
 0x158   :  { %203 = shalt.err (!%p200_p9)
}
 0x159   :  { %158 = dma.vmem_to_hbm [thread:$0]  %s156_s1, 16, %s301_s3, [#allocation5]  }
 0x15a   :  { %214 = dma.done.wait [#allocation5], 16  }
 0x15b   :  { %215 = vsyncadd [#allocation5], 4294967280 }
 0x15c   :  { %162 = vsyncpa [#allocation4], 1 }
 0x15d   :  { %163 = vsyncpa [#allocation5], 1 }

</bundles_post_ra>
